<compile_context>
chip_gen: v6e
topology: v6e:2x2x1
jax: 0.10.0
libtpu: 0.0.40
codegen_flags: <defaults>
</compile_context>

<pallas_src>
import jax
import jax.numpy as jnp
from jax.experimental import pallas as pl
from jax.experimental.pallas import tpu as pltpu

X_MEAN = -0.47326732673267324
V_MEAN = 0.006419641964196421
X_STD = 0.4221797992305611
V_STD = 0.030727780763044565

STATE_DIM = 2
ACTION_DIM = 3
HIDDEN = 128


def mixed_model_kernel(xT_ref, w1a_ref, w1b_ref, b1_ref, w2t_ref, b2t_ref, o_ref):
    # x arrives transposed: (STATE_DIM, block_b) -> batch on the lane axis.
    # Normalization is already folded into w1a/w1b/b1.
    x0 = xT_ref[0:1, :]                      # (1, bb) position row
    x1 = xT_ref[1:2, :]                      # (1, bb) velocity row

    # Layer 1 (2 -> 128) on the VPU: two broadcast-FMAs, no MXU.
    h = w1a_ref[...] * x0 + w1b_ref[...] * x1 + b1_ref[...]   # (HIDDEN, bb)
    h = jnp.maximum(h, 0.0)

    # Layer 2 (128 -> 3) on the MXU, (3,128)@(128,bb) so the result is lane-dense.
    logits = jnp.dot(w2t_ref[...], h,
                     preferred_element_type=jnp.float32) + b2t_ref[...]  # (3, bb)

    l0 = logits[0:1, :]
    l1 = logits[1:2, :]
    l2 = logits[2:3, :]
    m = jnp.maximum(jnp.maximum(l0, l1), l2)
    e0 = jnp.exp(l0 - m)
    e1 = jnp.exp(l1 - m)
    e2 = jnp.exp(l2 - m)

    # expectation = softmax(logits) @ [[0],[1],[2]] with the division folded in.
    o_ref[...] = (e1 + 2.0 * e2) / (e0 + e1 + e2)               # (1, bb)


def init_policy_params(key):
    """Deterministic init mimicking nn.Linear default (U(-1/sqrt(fan_in), +))."""
    k1, k2, k3, k4 = jax.random.split(key, 4)
    lim1 = 1.0 / jnp.sqrt(jnp.float32(STATE_DIM))
    lim2 = 1.0 / jnp.sqrt(jnp.float32(HIDDEN))
    w1 = jax.random.uniform(k1, (STATE_DIM, HIDDEN), jnp.float32, -lim1, lim1)
    b1 = jax.random.uniform(k2, (HIDDEN,), jnp.float32, -lim1, lim1)
    w2 = jax.random.uniform(k3, (HIDDEN, ACTION_DIM), jnp.float32, -lim2, lim2)
    b2 = jax.random.uniform(k4, (ACTION_DIM,), jnp.float32, -lim2, lim2)
    return w1, b1, w2, b2


def _round_up(n, m):
    return ((n + m - 1) // m) * m


def mixed_model_forward(x, params, *, block_b=512):
    B, F = x.shape
    assert F == STATE_DIM
    w1, b1, w2, b2 = params

    # Lane-aligned batch tile; pad the batch so any B works.
    bb = min(block_b, _round_up(B, 128))
    bb = max(128, (bb // 128) * 128)
    B_pad = _round_up(B, bb)

    mean = jnp.array([X_MEAN, V_MEAN], dtype=jnp.float32)
    std = jnp.array([X_STD, V_STD], dtype=jnp.float32)

    # Fold input normalization into layer-1 weights (one-time wrapper cost):
    #   h = w1^T @ ((x - mean)/std) + b1  ==  (w1/std)^T @ x + (b1 - (mean/std)@w1)
    inv_std = 1.0 / std                                   # (2,)
    w1f = w1 * inv_std[:, None]                           # (2, H)
    b1f = b1 - (mean * inv_std) @ w1                      # (H,)

    # Transposed, lane-dense layouts: batch on the last (lane) axis.
    xT = x.astype(jnp.float32).T                          # (2, B)
    if B_pad != B:
        xT = jnp.pad(xT, ((0, 0), (0, B_pad - B)))        # zero-padded lanes
    w1a = w1f[0].reshape(HIDDEN, 1)                       # (H, 1)
    w1b = w1f[1].reshape(HIDDEN, 1)                       # (H, 1)
    b1t = b1f.reshape(HIDDEN, 1)                          # (H, 1)
    w2t = w2.T                                            # (3, H)
    b2t = b2.reshape(ACTION_DIM, 1)                       # (3, 1)

    def const(shape):
        # whole-array block, resident (same block index) across the batch grid
        return pl.BlockSpec(shape, lambda i, _s=shape: tuple(0 for _ in _s))

    weight_bytes = 4 * (HIDDEN * STATE_DIM + HIDDEN + HIDDEN * ACTION_DIM + ACTION_DIM)
    cost = pl.CostEstimate(
        flops=B_pad * (5 * HIDDEN + 2 * HIDDEN * ACTION_DIM + 12),
        transcendentals=B_pad * ACTION_DIM,
        bytes_accessed=B_pad * (STATE_DIM + 1) * 4 + weight_bytes,
    )

    outT = pl.pallas_call(
        mixed_model_kernel,
        out_shape=jax.ShapeDtypeStruct((1, B_pad), jnp.float32),
        grid=(B_pad // bb,),
        in_specs=[
            pl.BlockSpec((STATE_DIM, bb), lambda i: (0, i)),        # x^T
            const((HIDDEN, 1)),                                     # w1/std, col 0
            const((HIDDEN, 1)),                                     # w1/std, col 1
            const((HIDDEN, 1)),                                     # folded b1
            const((ACTION_DIM, HIDDEN)),                            # w2^T
            const((ACTION_DIM, 1)),                                 # b2
        ],
        out_specs=pl.BlockSpec((1, bb), lambda i: (0, i)),          # lane-dense row
        compiler_params=pltpu.CompilerParams(
            dimension_semantics=("parallel",)),
        cost_estimate=cost,
    )(xT, w1a, w1b, b1t, w2t, b2t)

    return outT[0, :B].reshape(B, 1)


def reference_forward(x, params):
    w1, b1, w2, b2 = params
    mean = jnp.array([X_MEAN, V_MEAN], dtype=jnp.float32)
    std = jnp.array([X_STD, V_STD], dtype=jnp.float32)
    xn = (x - mean) / std
    h = jnp.maximum(xn @ w1 + b1, 0.0)
    probs = jax.nn.softmax(h @ w2 + b2, axis=-1)
    actions = jnp.arange(ACTION_DIM, dtype=jnp.float32).reshape(ACTION_DIM, 1)
    return probs @ actions


if __name__ == "__main__":
    key = jax.random.PRNGKey(0)
    kx, kp = jax.random.split(key)

    # Batch of mountain-car states (position, velocity); 2 grid steps of 128
    # so the "parallel" batch axis exercises both v7x TensorCores.
    B = 256
    x = jax.random.normal(kx, (B, STATE_DIM), dtype=jnp.float32)
    params = init_policy_params(kp)

    out = mixed_model_forward(x, params, block_b=128)
    out = jax.block_until_ready(out)

    ref = reference_forward(x, params)
    assert out.shape == (B, 1)
    # rtol slightly looser than 1e-5: folding mean/std into w1/b1 and the MXU
    # accumulation-order change move rounding by a few ULP at these magnitudes.
    err = float(jnp.max(jnp.abs(out - ref)))
    assert jnp.allclose(out, ref, atol=1e-5, rtol=1e-4), f"max abs err {err}"

    print("KERNEL_OK")
</pallas_src>

<mosaic_0001>
module attributes {stable_mosaic.version = 11 : i64} {
  func.func @mixed_model_kernel(%arg0: i32, %arg1: memref<2x128xf32, #tpu.memory_space<vmem>>, %arg2: memref<128x1xf32, #tpu.memory_space<vmem>>, %arg3: memref<128x1xf32, #tpu.memory_space<vmem>>, %arg4: memref<128x1xf32, #tpu.memory_space<vmem>>, %arg5: memref<3x128xf32, #tpu.memory_space<vmem>>, %arg6: memref<3x1xf32, #tpu.memory_space<vmem>>, %arg7: memref<1x128xf32, #tpu.memory_space<vmem>>) attributes {dimension_semantics = [#tpu.dimension_semantics<parallel>], iteration_bounds = array<i64: 2>, scalar_prefetch = 0 : i64, scratch_operands = 0 : i64, tpu.core_type = #tpu.core_type<tc>, window_params = [{transform_indices = @transform_0, window_bounds = array<i64: 2, 128>}, {pipeline_mode = #tpu.pipeline_mode<synchronous>, transform_indices = @transform_1, window_bounds = array<i64: 128, 1>}, {pipeline_mode = #tpu.pipeline_mode<synchronous>, transform_indices = @transform_2, window_bounds = array<i64: 128, 1>}, {pipeline_mode = #tpu.pipeline_mode<synchronous>, transform_indices = @transform_3, window_bounds = array<i64: 128, 1>}, {pipeline_mode = #tpu.pipeline_mode<synchronous>, transform_indices = @transform_4, window_bounds = array<i64: 3, 128>}, {pipeline_mode = #tpu.pipeline_mode<synchronous>, transform_indices = @transform_5, window_bounds = array<i64: 3, 1>}, {transform_indices = @transform_6, window_bounds = array<i64: 1, 128>}]} {
    %c0 = arith.constant 0 : index
    %c0_0 = arith.constant 0 : index
    %0 = vector.load %arg1[%c0, %c0_0] : memref<2x128xf32, #tpu.memory_space<vmem>>, vector<1x128xf32>
    %c1 = arith.constant 1 : index
    %c0_1 = arith.constant 0 : index
    %1 = vector.load %arg1[%c1, %c0_1] : memref<2x128xf32, #tpu.memory_space<vmem>>, vector<1x128xf32>
    %c0_2 = arith.constant 0 : index
    %c0_3 = arith.constant 0 : index
    %2 = vector.load %arg2[%c0_2, %c0_3] : memref<128x1xf32, #tpu.memory_space<vmem>>, vector<128x1xf32>
    %3 = vector.broadcast %2 : vector<128x1xf32> to vector<128x128xf32>
    %4 = vector.broadcast %0 : vector<1x128xf32> to vector<128x128xf32>
    %5 = arith.mulf %3, %4 : vector<128x128xf32>
    %c0_4 = arith.constant 0 : index
    %c0_5 = arith.constant 0 : index
    %6 = vector.load %arg3[%c0_4, %c0_5] : memref<128x1xf32, #tpu.memory_space<vmem>>, vector<128x1xf32>
    %7 = vector.broadcast %6 : vector<128x1xf32> to vector<128x128xf32>
    %8 = vector.broadcast %1 : vector<1x128xf32> to vector<128x128xf32>
    %9 = arith.mulf %7, %8 : vector<128x128xf32>
    %10 = arith.addf %5, %9 : vector<128x128xf32>
    %c0_6 = arith.constant 0 : index
    %c0_7 = arith.constant 0 : index
    %11 = vector.load %arg4[%c0_6, %c0_7] : memref<128x1xf32, #tpu.memory_space<vmem>>, vector<128x1xf32>
    %12 = vector.broadcast %11 : vector<128x1xf32> to vector<128x128xf32>
    %13 = arith.addf %10, %12 : vector<128x128xf32>
    %cst = arith.constant 0.000000e+00 : f32
    %14 = vector.broadcast %cst : f32 to vector<128x128xf32>
    %15 = arith.maximumf %13, %14 : vector<128x128xf32>
    %c0_8 = arith.constant 0 : index
    %c0_9 = arith.constant 0 : index
    %16 = vector.load %arg5[%c0_8, %c0_9] : memref<3x128xf32, #tpu.memory_space<vmem>>, vector<3x128xf32>
    %cst_10 = arith.constant dense<0.000000e+00> : vector<3x128xf32>
    %17 = tpu.matmul %16, %15, %cst_10 {dimension_numbers = #tpu.dot_dimension_numbers<[1], [0], [0], [1], [0, 0, 1, 1], [], []>} : vector<3x128xf32>, vector<128x128xf32>, vector<3x128xf32> -> vector<3x128xf32>
    %c0_11 = arith.constant 0 : index
    %c0_12 = arith.constant 0 : index
    %18 = vector.load %arg6[%c0_11, %c0_12] : memref<3x1xf32, #tpu.memory_space<vmem>>, vector<3x1xf32>
    %19 = vector.broadcast %18 : vector<3x1xf32> to vector<3x128xf32>
    %20 = arith.addf %17, %19 : vector<3x128xf32>
    %21 = vector.extract_strided_slice %20 {offsets = [0, 0], sizes = [1, 128], strides = [1, 1]} : vector<3x128xf32> to vector<1x128xf32>
    %22 = vector.extract_strided_slice %20 {offsets = [1, 0], sizes = [1, 128], strides = [1, 1]} : vector<3x128xf32> to vector<1x128xf32>
    %23 = vector.extract_strided_slice %20 {offsets = [2, 0], sizes = [1, 128], strides = [1, 1]} : vector<3x128xf32> to vector<1x128xf32>
    %24 = arith.maximumf %21, %22 : vector<1x128xf32>
    %25 = arith.maximumf %24, %23 : vector<1x128xf32>
    %26 = arith.subf %21, %25 : vector<1x128xf32>
    %27 = math.exp %26 : vector<1x128xf32>
    %28 = arith.subf %22, %25 : vector<1x128xf32>
    %29 = math.exp %28 : vector<1x128xf32>
    %30 = arith.subf %23, %25 : vector<1x128xf32>
    %31 = math.exp %30 : vector<1x128xf32>
    %cst_13 = arith.constant 2.000000e+00 : f32
    %32 = vector.broadcast %cst_13 : f32 to vector<1x128xf32>
    %33 = arith.mulf %32, %31 : vector<1x128xf32>
    %34 = arith.addf %29, %33 : vector<1x128xf32>
    %35 = arith.addf %27, %29 : vector<1x128xf32>
    %36 = arith.addf %35, %31 : vector<1x128xf32>
    %37 = arith.divf %34, %36 : vector<1x128xf32>
    %c0_14 = arith.constant 0 : index
    %c0_15 = arith.constant 0 : index
    %38 = vector.load %arg7[%c0_14, %c0_15] : memref<1x128xf32, #tpu.memory_space<vmem>>, vector<1x128xf32>
    tpu.vector_store %arg7[%c0_14, %c0_15], %37 {strides = array<i32>} : memref<1x128xf32, #tpu.memory_space<vmem>>, vector<1x128xf32>,
    return
  }
  func.func @transform_0(%arg0: i32) -> (i32, i32) {
    %c0_i32 = arith.constant 0 : i32
    %c0_i32_0 = arith.constant 0 : i32
    return %c0_i32, %arg0 : i32, i32
  }
  func.func @transform_1(%arg0: i32) -> (i32, i32) {
    %c0_i32 = arith.constant 0 : i32
    %c0_i32_0 = arith.constant 0 : i32
    %c0_i32_1 = arith.constant 0 : i32
    return %c0_i32, %c0_i32_0 : i32, i32
  }
  func.func @transform_2(%arg0: i32) -> (i32, i32) {
    %c0_i32 = arith.constant 0 : i32
    %c0_i32_0 = arith.constant 0 : i32
    %c0_i32_1 = arith.constant 0 : i32
    return %c0_i32, %c0_i32_0 : i32, i32
  }
  func.func @transform_3(%arg0: i32) -> (i32, i32) {
    %c0_i32 = arith.constant 0 : i32
    %c0_i32_0 = arith.constant 0 : i32
    %c0_i32_1 = arith.constant 0 : i32
    return %c0_i32, %c0_i32_0 : i32, i32
  }
  func.func @transform_4(%arg0: i32) -> (i32, i32) {
    %c0_i32 = arith.constant 0 : i32
    %c0_i32_0 = arith.constant 0 : i32
    %c0_i32_1 = arith.constant 0 : i32
    return %c0_i32, %c0_i32_0 : i32, i32
  }
  func.func @transform_5(%arg0: i32) -> (i32, i32) {
    %c0_i32 = arith.constant 0 : i32
    %c0_i32_0 = arith.constant 0 : i32
    %c0_i32_1 = arith.constant 0 : i32
    return %c0_i32, %c0_i32_0 : i32, i32
  }
  func.func @transform_6(%arg0: i32) -> (i32, i32) {
    %c0_i32 = arith.constant 0 : i32
    %c0_i32_0 = arith.constant 0 : i32
    return %c0_i32, %arg0 : i32, i32
  }
}

</mosaic_0001>

<bundles_post_ra>
// kernel: tpu_custom_call.1
= control target key start
LH: loop header
LB: loop body
LE: loop exit
PB: predicated region body
PF: predicated region fallthrough
CT: control target
= control target key end

     0   :  { %11 = vsyncpa [#allocation3], 0  ;;  %s1314_s0 = inlined_call_operand.vmem [shape: f32[2,256], index: 0, kind: input, shape index: {}]   ;;  %s1315_s1 = inlined_call_operand.vmem [shape: f32[128,1], index: 1, kind: input, shape index: {}]   ;;  %s1316_s2 = inlined_call_operand.vmem [shape: f32[128,1], index: 2, kind: input, shape index: {}]   ;;  %s1317_s3 = inlined_call_operand.vmem [shape: f32[128,1], index: 3, kind: input, shape index: {}]   ;;  %s1318_s4 = inlined_call_operand.vmem [shape: f32[3,128], index: 4, kind: input, shape index: {}]   ;;  %s1319_s5 = inlined_call_operand.vmem [shape: f32[3,1], index: 5, kind: input, shape index: {}]   ;;  %s1320_s6 = inlined_call_operand.hbm [shape: f32[1,256], index: 6, kind: output, shape index: {}]  }
   0x1   :  { %13 = vsyncpa [#allocation3 + $0x1], 0  ;;  %s1024_s21 = smov 0   ;;  %s1026_s22 = smov 0  }
   0x2   :  { %s1028_s23 = smov 0   ;;  %s1030_s24 = smov 0  }
   0x3 LB: > { %s1045_s25 = sadd.s32 4294967295, %s983_s24   ;;  %s809_s26 = sadd.s32 4294967294, %s983_s24   ;;  %s983_s24 = sphi %s1030_s24, %s1326_s24   ;;  %s979_s23 = sphi %s1028_s23, %s1325_s23   ;;  %s975_s22 = sphi %s1026_s22, %s1324_s22   ;;  %s971_s21 = sphi %s1024_s21, %s1323_s21  }
   0x4   : > { %s1049_s27 = sadd.s32 1, %s983_s24   ;;  %s157_s28 = sadd.s32 1, %s979_s23 }
   0x5   : > { %s154_s29 = ssub.s32 %s983_s24, %s1049_s27  ;;  %p167_p0 = scmp.ne.s32.totalorder %s979_s23, %s975_s22 }
   0x6   : > { %p155_p1 = scmp.eq.s32.totalorder %s154_s29, 0  ;;  %p168_p2 = scmp.eq.s32.totalorder %s1045_s25, 1 }
   0x7   : > { %p173_p3 = scmp.ne.s32.totalorder %s975_s22, %s971_s21  ;;  %p174_p4 = scmp.eq.s32.totalorder %s809_s26, 1 }
   0x8   : > { %s1060_s30 = scalar_select %p155_p1, %s979_s23, %s157_s28  }
   0x9   : > { %p1062_p5 = por %p168_p2, %p167_p0  ;;  %p1066_p6 = por %p174_p4, %p173_p3 }
   0xa   : > { %p812_p7 = scmp.ge.s32.totalorder %s983_s24, 1  ;;  %p214_p8 = scmp.lt.s32.totalorder %s983_s24, 3 }
   0xc   : > { %p215_p9 = pnand %p812_p7, %p214_p8 }
   0xd   : > { %p242_p10 = scmp.lt.s32.totalorder (!%p215_p9), %s1045_s25, 1  ;;  %s240_s9 = sand.u32 (!%p215_p9), 1, %s975_s22  }
   0xe   : > { %218 = sbr.rel (%p215_p9) target bundleno = 502 (0x1f6), region = 44  ;;  %s816_s10 = sshll.u32 (!%p215_p9), %s1045_s25, 4 }
   0xf   : > { %s241_s11 = scalar_lea.vmem (!%p215_p9), [#allocation2], %s240_s9  ;;  %s752_s15 = scalar_lea.hbm (!%p215_p9), %s1320_s6, %s816_s10 }
  0x10   : > { %s754_s12 = sshll.u32 (!%p215_p9), %s241_s11, 4  ;;  %s742_s16 = scalar_lea.sflag (!%p215_p9), [#allocation3], %s240_s9  ;;  %s755_s12 = int_to_ptr.vmem [resolvable:$true] %s754_s12 }
  0x13   : > { %v263_v0 = vld [vmem:[%s1315_s1 + $0x78] sm:$0xff]  ;;  %v262_v1 = vld [vmem:[%s1315_s1 + $0x70] sm:$0xff]  ;;  %v985_v2 = vmov 0   ;;  %v377_v5 = vld [vmem:[%s1316_s2 + $0x68] sm:$0xff]  ;;  %v986_v9 = vmov 0.0   ;;  %vm987_vm0 = vmmov 0  }
  0x14   : > { %914 = vset.pattern.permute.xlu1 %v985_v2  ;;  %913 = vset.pattern.permute.xlu0 %v985_v2  ;;  %v379_v3 = vld [vmem:[%s1316_s2 + $0x78] sm:$0xff]  ;;  %v378_v4 = vld [vmem:[%s1316_s2 + $0x70] sm:$0xff]  ;;  %v261_v6 = vld [vmem:[%s1315_s1 + $0x68] sm:$0xff]  ;;  %s243_s17 = scalar_select %p242_p10, %s1045_s25, 1 }
  0x15   : > { %341 = vperm.xlu0 %913, %v263_v0   ;;  %336 = vperm.xlu1 %914, %v262_v1   ;;  %v511_v7 = vld [vmem:[%s1317_s3 + $0x78] sm:$0xff]  ;;  %v260_v8 = vld [vmem:[%s1315_s1 + $0x60] sm:$0xff]  ;;  %v510_v11 = vld [vmem:[%s1317_s3 + $0x70] sm:$0xff] }
  0x16   : > { %836 = vmatprep.subr.mxu0 %v986_v9  ;;  %v376_v10 = vld [vmem:[%s1316_s2 + $0x60] sm:$0xff]  ;;  %v375_v12 = vld [vmem:[%s1316_s2 + $0x58] sm:$0xff]  ;;  %v509_v14 = vld [vmem:[%s1317_s3 + $0x68] sm:$0xff]  ;;  %868 = vmatprep.mubr.msk.f32.mxu0 %vm987_vm0, %v986_v9  ;;  %s813_s18 = sshll.u32 %s243_s17, 1  ;;  %s923_s17 = scalar_lea.vmem %s755_s12, 16 }
  0x17   : > { %v259_v13 = vld [vmem:[%s1315_s1 + $0x58] sm:$0xff]  ;;  %v258_v15 = vld [vmem:[%s1315_s1 + $0x50] sm:$0xff]  ;;  %v508_v17 = vld [vmem:[%s1317_s3 + $0x60] sm:$0xff]  ;;  %s245_s26 = scalar_lea.vmem %s1314_s0, %s813_s18  ;;  %p924_p11 = scmp.ne.s32.totalorder %s755_s12, %s923_s17 }
  0x18   : > { %v374_v16 = vld [vmem:[%s1316_s2 + $0x50] sm:$0xff]  ;;  %v373_v18 = vld [vmem:[%s1316_s2 + $0x48] sm:$0xff]  ;;  %v507_v20 = vld [vmem:[%s1317_s3 + $0x58] sm:$0xff]  ;;  %s988_s18 = smov [#allocation2]  }
  0x19   : > { %457 = vperm.xlu0 %913, %v379_v3   ;;  %452 = vperm.xlu1 %914, %v378_v4   ;;  %v257_v19 = vld [vmem:[%s1315_s1 + $0x48] sm:$0xff]  ;;  %v256_v21 = vld [vmem:[%s1315_s1 + $0x40] sm:$0xff]  ;;  %v506_v23 = vld [vmem:[%s1317_s3 + $0x50] sm:$0xff]  ;;  %p925_p12 = pnand %p924_p11, %p1062_p5  ;;  %s927_s19 = sshll.u32 %s988_s18, 4  ;;  %s928_s19 = int_to_ptr.vmem [resolvable:$false] %s927_s19 }
  0x1a   : > { %v372_v22 = vld [vmem:[%s1316_s2 + $0x40] sm:$0xff]  ;;  %v371_v24 = vld [vmem:[%s1316_s2 + $0x38] sm:$0xff]  ;;  %v505_v26 = vld [vmem:[%s1317_s3 + $0x48] sm:$0xff]  ;;  %s929_s25 = scalar_lea.vmem %s928_s19, 32  ;;  %p930_p0 = scmp.lt.s32.totalorder %s755_s12, %s928_s19 }
  0x1b   : > { %v255_v25 = vld [vmem:[%s1315_s1 + $0x38] sm:$0xff]  ;;  %v254_v27 = vld [vmem:[%s1315_s1 + $0x30] sm:$0xff]  ;;  %v504_v29 = vld [vmem:[%s1317_s3 + $0x40] sm:$0xff]  ;;  %p926_p13 = pneg %p925_p12  ;;  %p931_p1 = scmp.lt.s32.totalorder %s929_s25, %s923_s17 }
  0x1c   : > { %v370_v28 = vld [vmem:[%s1316_s2 + $0x30] sm:$0xff]  ;;  %v369_v30 = vld [vmem:[%s1316_s2 + $0x28] sm:$0xff]  ;;  %v503_v32 = vld [vmem:[%s1317_s3 + $0x38] sm:$0xff] }
  0x1d   : > { %447 = vperm.xlu1 %914, %v377_v5   ;;  %331 = vperm.xlu0 %913, %v261_v6   ;;  %v253_v31 = vld [vmem:[%s1315_s1 + $0x28] sm:$0xff]  ;;  %v252_v33 = vld [vmem:[%s1315_s1 + $0x20] sm:$0xff]  ;;  %v502_v35 = vld [vmem:[%s1317_s3 + $0x30] sm:$0xff]  ;;  %p932_p2 = por %p931_p1, %p930_p0 }
  0x1e   : > { %v368_v34 = vld [vmem:[%s1316_s2 + $0x20] sm:$0xff]  ;;  %v367_v36 = vld [vmem:[%s1316_s2 + $0x18] sm:$0xff]  ;;  %v501_v38 = vld [vmem:[%s1317_s3 + $0x28] sm:$0xff] }
  0x1f   : > { %v251_v37 = vld [vmem:[%s1315_s1 + $0x18] sm:$0xff]  ;;  %v250_v39 = vld [vmem:[%s1315_s1 + $0x10] sm:$0xff]  ;;  %v500_v41 = vld [vmem:[%s1317_s3 + $0x20] sm:$0xff]  ;;  %p933_p3 = pnand %p932_p2, %p926_p13 }
  0x20   : > { %v366_v40 = vld [vmem:[%s1316_s2 + $0x10] sm:$0xff]  ;;  %v365_v42 = vld [vmem:[%s1316_s2 + $0x8] sm:$0xff]  ;;  %v499_v44 = vld [vmem:[%s1317_s3 + $0x18] sm:$0xff] }
  0x21   : > { %589 = vperm.xlu0 %913, %v511_v7   ;;  %326 = vperm.xlu1 %914, %v260_v8   ;;  %v249_v43 = vld [vmem:[%s1315_s1 + $0x8] sm:$0xff]  ;;  %v248_v45 = vld [vmem:[%s1315_s1] sm:$0xff]  ;;  %v498_v47 = vld [vmem:[%s1317_s3 + $0x10] sm:$0xff] }
  0x22   : > { %v364_v46 = vld [vmem:[%s1316_s2] sm:$0xff]  ;;  %v497_v48 = vld [vmem:[%s1317_s3 + $0x8] sm:$0xff] }
  0x23   : > { %v496_v49 = vld [vmem:[%s1317_s3] sm:$0xff] }
  0x24   : > { %v625_v50 = vld [vmem:[%s1319_s5] sm:$0x7] }
  0x25   : > { %442 = vperm.xlu0 %913, %v376_v10   ;;  %584 = vperm.xlu1 %914, %v510_v11   ;;  %v1226_v54 = vld [vmem:[%s245_s26 + $0x1] ss:$0 sm:$0xff]  ;;  %v1228_v56 = vld [vmem:[%s245_s26] ss:$0 sm:$0xff] }
  0x29   : > { %437 = vperm.xlu1 %914, %v375_v12   ;;  %321 = vperm.xlu0 %913, %v259_v13  }
  0x2d   : > { %579 = vperm.xlu0 %913, %v509_v14   ;;  %316 = vperm.xlu1 %914, %v258_v15  }
  0x31   : > { %432 = vperm.xlu0 %913, %v374_v16   ;;  %574 = vperm.xlu1 %914, %v508_v17  }
  0x35   : > { %427 = vperm.xlu1 %914, %v373_v18   ;;  %311 = vperm.xlu0 %913, %v257_v19  }
  0x39   : > { %569 = vperm.xlu0 %913, %v507_v20   ;;  %306 = vperm.xlu1 %914, %v256_v21  }
  0x3d   : > { %422 = vperm.xlu0 %913, %v372_v22   ;;  %564 = vperm.xlu1 %914, %v506_v23  }
  0x41   : > { %417 = vperm.xlu1 %914, %v371_v24   ;;  %301 = vperm.xlu0 %913, %v255_v25  }
  0x45   : > { %559 = vperm.xlu0 %913, %v505_v26   ;;  %296 = vperm.xlu1 %914, %v254_v27  }
  0x49   : > { %412 = vperm.xlu0 %913, %v370_v28   ;;  %554 = vperm.xlu1 %914, %v504_v29  }
  0x4d   : > { %407 = vperm.xlu1 %914, %v369_v30   ;;  %291 = vperm.xlu0 %913, %v253_v31  }
  0x51   : > { %549 = vperm.xlu0 %913, %v503_v32   ;;  %286 = vperm.xlu1 %914, %v252_v33  }
  0x55   : > { %402 = vperm.xlu0 %913, %v368_v34   ;;  %544 = vperm.xlu1 %914, %v502_v35  }
  0x59   : > { %397 = vperm.xlu1 %914, %v367_v36   ;;  %281 = vperm.xlu0 %913, %v251_v37  }
  0x5d   : > { %539 = vperm.xlu0 %913, %v501_v38   ;;  %276 = vperm.xlu1 %914, %v250_v39  }
  0x61   : > { %392 = vperm.xlu0 %913, %v366_v40   ;;  %534 = vperm.xlu1 %914, %v500_v41  }
  0x65   : > { %387 = vperm.xlu1 %914, %v365_v42   ;;  %271 = vperm.xlu0 %913, %v249_v43  }
  0x69   : > { %529 = vperm.xlu0 %913, %v499_v44   ;;  %266 = vperm.xlu1 %914, %v248_v45  }
  0x6d   : > { %382 = vperm.xlu0 %913, %v364_v46   ;;  %524 = vperm.xlu1 %914, %v498_v47  }
  0x71   : > { %519 = vperm.xlu0 %913, %v497_v48   ;;  %514 = vperm.xlu1 %914, %v496_v49  }
  0x75   : > { %628 = vperm.xlu0 %913, %v625_v50  }
  0x90   : > { %v342_v51 = vpop.permute.xlu0 %341  ;;  %v337_v52 = vpop.permute.xlu1 %336 }
  0x91   : > { %v363_v60 = vmul.f32 %v1228_v56, %v342_v51  ;;  %v362_v1 = vmul.f32 %v1228_v56, %v337_v52 }
  0x94   : > { %v458_v53 = vpop.permute.xlu0 %457  ;;  %v453_v55 = vpop.permute.xlu1 %452 }
  0x95   : > { %v479_v57 = vmul.f32 %v1226_v54, %v458_v53  ;;  %v478_v61 = vmul.f32 %v1226_v54, %v453_v55 }
  0x97   : > { %v495_v62 = vadd.f32 %v479_v57, %v363_v60  ;;  %v494_v4 = vadd.f32 %v478_v61, %v362_v1 }
  0x98   : > { %v448_v58 = vpop.permute.xlu1 %447  ;;  %v332_v59 = vpop.permute.xlu0 %331 }
  0x99   : > { %v477_v8 = vmul.f32 %v1226_v54, %v448_v58  ;;  %v361_v10 = vmul.f32 %v1228_v56, %v332_v59 }
  0x9b   : > { %v493_v15 = vadd.f32 %v477_v8, %v361_v10 }
  0x9c   : > { %v590_v63 = vpop.permute.xlu0 %589  ;;  %v327_v0 = vpop.permute.xlu1 %326 }
  0x9d   : > { %v607_v2 = vadd.f32 %v590_v63, %v495_v62  ;;  %v360_v18 = vmul.f32 %v1228_v56, %v327_v0 }
  0x9f   : > { %v623_v3 = vmax.f32 %v607_v2, 0.0 }
  0xa0   : > { %v443_v5 = vpop.permute.xlu0 %442  ;;  %v585_v6 = vpop.permute.xlu1 %584 }
  0xa1   : > { %v606_v7 = vadd.f32 %v585_v6, %v494_v4  ;;  %837 = vmatpush3.msra.mxu0 %v623_v3  ;;  %v476_v14 = vmul.f32 %v1226_v54, %v443_v5 }
  0xa2   : > { %838 = vmatprep.subr.mxu0 %v986_v9 }
  0xa3   : > { %v622_v11 = vmax.f32 %v606_v7, 0.0  ;;  %v492_v21 = vadd.f32 %v476_v14, %v360_v18 }
  0xa4   : > { %v438_v12 = vpop.permute.xlu1 %437  ;;  %v322_v13 = vpop.permute.xlu0 %321 }
  0xa5   : > { %839 = vmatpush3.msra.mxu0 %v622_v11  ;;  %v475_v25 = vmul.f32 %v1226_v54, %v438_v12  ;;  %v359_v26 = vmul.f32 %v1228_v56, %v322_v13 }
  0xa6   : > { %840 = vmatprep.subr.mxu0 %v986_v9 }
  0xa7   : > { %v491_v31 = vadd.f32 %v475_v25, %v359_v26 }
  0xa8   : > { %v580_v16 = vpop.permute.xlu0 %579  ;;  %v317_v17 = vpop.permute.xlu1 %316 }
  0xa9   : > { %v605_v19 = vadd.f32 %v580_v16, %v493_v15  ;;  %v358_v34 = vmul.f32 %v1228_v56, %v317_v17 }
  0xab   : > { %v621_v20 = vmax.f32 %v605_v19, 0.0 }
  0xac   : > { %v433_v22 = vpop.permute.xlu0 %432  ;;  %v575_v23 = vpop.permute.xlu1 %574 }
  0xad   : > { %v604_v24 = vadd.f32 %v575_v23, %v492_v21  ;;  %841 = vmatpush3.msra.mxu0 %v621_v20  ;;  %v474_v30 = vmul.f32 %v1226_v54, %v433_v22 }
  0xae   : > { %842 = vmatprep.subr.mxu0 %v986_v9 }
  0xaf   : > { %v620_v27 = vmax.f32 %v604_v24, 0.0  ;;  %v490_v37 = vadd.f32 %v474_v30, %v358_v34 }
  0xb0   : > { %v428_v28 = vpop.permute.xlu1 %427  ;;  %v312_v29 = vpop.permute.xlu0 %311 }
  0xb1   : > { %843 = vmatpush3.msra.mxu0 %v620_v27  ;;  %v473_v41 = vmul.f32 %v1226_v54, %v428_v28  ;;  %v357_v42 = vmul.f32 %v1228_v56, %v312_v29 }
  0xb2   : > { %844 = vmatprep.subr.mxu0 %v986_v9 }
  0xb3   : > { %v489_v47 = vadd.f32 %v473_v41, %v357_v42 }
  0xb4   : > { %v570_v32 = vpop.permute.xlu0 %569  ;;  %v307_v33 = vpop.permute.xlu1 %306 }
  0xb5   : > { %v603_v35 = vadd.f32 %v570_v32, %v491_v31  ;;  %v356_v50 = vmul.f32 %v1228_v56, %v307_v33 }
  0xb7   : > { %v619_v36 = vmax.f32 %v603_v35, 0.0 }
  0xb8   : > { %v423_v38 = vpop.permute.xlu0 %422  ;;  %v565_v39 = vpop.permute.xlu1 %564 }
  0xb9   : > { %v602_v40 = vadd.f32 %v565_v39, %v490_v37  ;;  %845 = vmatpush3.msra.mxu0 %v619_v36  ;;  %v472_v46 = vmul.f32 %v1226_v54, %v423_v38 }
  0xba   : > { %846 = vmatprep.subr.mxu0 %v986_v9 }
  0xbb   : > { %v618_v43 = vmax.f32 %v602_v40, 0.0  ;;  %v488_v53 = vadd.f32 %v472_v46, %v356_v50 }
  0xbc   : > { %v418_v44 = vpop.permute.xlu1 %417  ;;  %v302_v45 = vpop.permute.xlu0 %301 }
  0xbd   : > { %847 = vmatpush3.msra.mxu0 %v618_v43  ;;  %v471_v59 = vmul.f32 %v1226_v54, %v418_v44  ;;  %v355_v60 = vmul.f32 %v1228_v56, %v302_v45 }
  0xbe   : > { %848 = vmatprep.subr.mxu0 %v986_v9 }
  0xbf   : > { %v487_v1 = vadd.f32 %v471_v59, %v355_v60 }
  0xc0   : > { %v560_v48 = vpop.permute.xlu0 %559  ;;  %v297_v49 = vpop.permute.xlu1 %296 }
  0xc1   : > { %v601_v51 = vadd.f32 %v560_v48, %v489_v47  ;;  %v354_v4 = vmul.f32 %v1228_v56, %v297_v49 }
  0xc3   : > { %v617_v52 = vmax.f32 %v601_v51, 0.0 }
  0xc4   : > { %v413_v55 = vpop.permute.xlu0 %412  ;;  %v555_v57 = vpop.permute.xlu1 %554 }
  0xc5   : > { %v600_v58 = vadd.f32 %v555_v57, %v488_v53  ;;  %849 = vmatpush3.msra.mxu0 %v617_v52  ;;  %v470_v0 = vmul.f32 %v1226_v54, %v413_v55 }
  0xc6   : > { %850 = vmatprep.subr.mxu0 %v986_v9 }
  0xc7   : > { %v616_v61 = vmax.f32 %v600_v58, 0.0  ;;  %v486_v7 = vadd.f32 %v470_v0, %v354_v4 }
  0xc8   : > { %v408_v62 = vpop.permute.xlu1 %407  ;;  %v292_v63 = vpop.permute.xlu0 %291 }
  0xc9   : > { %851 = vmatpush3.msra.mxu0 %v616_v61  ;;  %v469_v12 = vmul.f32 %v1226_v54, %v408_v62  ;;  %v353_v13 = vmul.f32 %v1228_v56, %v292_v63 }
  0xca   : > { %852 = vmatprep.subr.mxu0 %v986_v9 }
  0xcb   : > { %v485_v18 = vadd.f32 %v469_v12, %v353_v13 }
  0xcc   : > { %v550_v2 = vpop.permute.xlu0 %549  ;;  %v287_v3 = vpop.permute.xlu1 %286 }
  0xcd   : > { %v599_v5 = vadd.f32 %v550_v2, %v487_v1  ;;  %v352_v21 = vmul.f32 %v1228_v56, %v287_v3 }
  0xcf   : > { %v615_v6 = vmax.f32 %v599_v5, 0.0 }
  0xd0   : > { %v403_v8 = vpop.permute.xlu0 %402  ;;  %v545_v10 = vpop.permute.xlu1 %544 }
  0xd1   : > { %v598_v11 = vadd.f32 %v545_v10, %v486_v7  ;;  %853 = vmatpush3.msra.mxu0 %v615_v6  ;;  %v468_v17 = vmul.f32 %v1226_v54, %v403_v8 }
  0xd2   : > { %854 = vmatprep.subr.mxu0 %v986_v9 }
  0xd3   : > { %v614_v14 = vmax.f32 %v598_v11, 0.0  ;;  %v484_v24 = vadd.f32 %v468_v17, %v352_v21 }
  0xd4   : > { %v398_v15 = vpop.permute.xlu1 %397  ;;  %v282_v16 = vpop.permute.xlu0 %281 }
  0xd5   : > { %855 = vmatpush3.msra.mxu0 %v614_v14  ;;  %v467_v28 = vmul.f32 %v1226_v54, %v398_v15  ;;  %v351_v29 = vmul.f32 %v1228_v56, %v282_v16 }
  0xd6   : > { %856 = vmatprep.subr.mxu0 %v986_v9 }
  0xd7   : > { %v483_v34 = vadd.f32 %v467_v28, %v351_v29 }
  0xd8   : > { %v540_v19 = vpop.permute.xlu0 %539  ;;  %v277_v20 = vpop.permute.xlu1 %276 }
  0xd9   : > { %v597_v22 = vadd.f32 %v540_v19, %v485_v18  ;;  %v350_v37 = vmul.f32 %v1228_v56, %v277_v20 }
  0xdb   : > { %v613_v23 = vmax.f32 %v597_v22, 0.0 }
  0xdc   : > { %v393_v25 = vpop.permute.xlu0 %392  ;;  %v535_v26 = vpop.permute.xlu1 %534 }
  0xdd   : > { %v596_v27 = vadd.f32 %v535_v26, %v484_v24  ;;  %857 = vmatpush3.msra.mxu0 %v613_v23  ;;  %v466_v33 = vmul.f32 %v1226_v54, %v393_v25 }
  0xde   : > { %858 = vmatprep.subr.mxu0 %v986_v9 }
  0xdf   : > { %v612_v30 = vmax.f32 %v596_v27, 0.0  ;;  %v482_v42 = vadd.f32 %v466_v33, %v350_v37 }
  0xe0   : > { %v388_v31 = vpop.permute.xlu1 %387  ;;  %v272_v32 = vpop.permute.xlu0 %271 }
  0xe1   : > { %859 = vmatpush3.msra.mxu0 %v612_v30  ;;  %v465_v39 = vmul.f32 %v1226_v54, %v388_v31  ;;  %v349_v40 = vmul.f32 %v1228_v56, %v272_v32 }
  0xe2   : > { %860 = vmatprep.subr.mxu0 %v986_v9 }
  0xe3   : > { %v481_v49 = vadd.f32 %v465_v39, %v349_v40 }
  0xe4   : > { %v530_v35 = vpop.permute.xlu0 %529  ;;  %v267_v36 = vpop.permute.xlu1 %266 }
  0xe5   : > { %v595_v38 = vadd.f32 %v530_v35, %v483_v34  ;;  %v348_v45 = vmul.f32 %v1228_v56, %v267_v36 }
  0xe7   : > { %v611_v41 = vmax.f32 %v595_v38, 0.0 }
  0xe8   : > { %v383_v43 = vpop.permute.xlu0 %382  ;;  %v525_v44 = vpop.permute.xlu1 %524 }
  0xe9   : > { %v464_v46 = vmul.f32 %v1226_v54, %v383_v43  ;;  %v594_v47 = vadd.f32 %v525_v44, %v482_v42  ;;  %861 = vmatpush3.msra.mxu0 %v611_v41  ;;  %v624_v54 = vld [vmem:[%s1318_s4] sm:$0x7] }
  0xea   : > { %862 = vmatprep.subr.mxu0 %v986_v9 }
  0xeb   : > { %v610_v48 = vmax.f32 %v594_v47, 0.0  ;;  %v480_v50 = vadd.f32 %v464_v46, %v348_v45 }
  0xec   : > { %v520_v51 = vpop.permute.xlu0 %519  ;;  %v515_v52 = vpop.permute.xlu1 %514 }
  0xed   : > { %v593_v53 = vadd.f32 %v520_v51, %v481_v49  ;;  %v592_v55 = vadd.f32 %v515_v52, %v480_v50  ;;  %863 = vmatpush3.msra.mxu0 %v610_v48 }
  0xee   : > { %864 = vmatprep.subr.mxu0 %v986_v9 }
  0xef   : > { %v609_v57 = vmax.f32 %v593_v53, 0.0  ;;  %v608_v58 = vmax.f32 %v592_v55, 0.0 }
  0xf0   : > { %v629_v56 = vpop.permute.xlu0 %628 }
  0xf1   : > { %865 = vmatpush3.msra.mxu0 %v609_v57 }
  0xf2   : > { %866 = vmatprep.subr.mxu0 %v986_v9 }
  0xf3   : > { %867 = vmatpush3.msra.mxu0 %v608_v58 }
  0xf4   : > { %869 = vmatmul.mubr.f32.vlgmr.msra.gmra.mxu0 %v624_v54 }
 0x1b4   : > { %v697_v59 = vpop.f32.mrf.mxu0 }
 0x1b5   : > { %v698_v60 = vadd.f32 %v697_v59, %v629_v56 }
 0x1b6   : > { %v870_v61 = vpop.f32.mrf.mxu0 }
 0x1b7   : > { %v702_v62 = vrot.slane %v698_v60, 1  ;;  %v705_v0 = vrot.slane %v698_v60, 2 }
 0x1b9   : > { %v704_v63 = vmax.f32 %v698_v60, %v702_v62 }
 0x1bb   : > { %v707_v1 = vmax.f32 %v704_v63, %v705_v0 }
 0x1bd   : > { %v708_v2 = vsub.f32 %v698_v60, %v707_v1  ;;  %v712_v3 = vrot.slane %v707_v1, 7  ;;  %v717_v4 = vrot.slane %v707_v1, 6 }
 0x1bf   : > { %v714_v5 = vsub.f32 %v698_v60, %v712_v3  ;;  %v719_v6 = vsub.f32 %v698_v60, %v717_v4  ;;  %v709_v7 = vmul.f32 1.442695, %v708_v2 }
 0x1c1   : > { %v715_v8 = vmul.f32 1.442695, %v714_v5  ;;  %v720_v10 = vmul.f32 1.442695, %v719_v6 }
 0x1c3   : > { %915 = vpow2.f32 %v715_v8 }
 0x1c4   : > { %917 = vpow2.f32 %v720_v10 }
 0x1c5   : > { %919 = vpow2.f32 %v709_v7 }
 0x1d0   : > { %v916_v9 = vpop.eup %915 }
 0x1d1   : > { %v918_v11 = vpop.eup %917  ;;  %v728_v12 = vrot.slane %v916_v9, 1 }
 0x1d2   : > { %v920_v13 = vpop.eup %919  ;;  %v732_v15 = vrot.slane %v918_v11, 2  ;;  %v722_v18 = vmul.f32 2.0, %v918_v11 }
 0x1d3   : > { %v730_v14 = vadd.f32 %v920_v13, %v728_v12 }
 0x1d4   : > { %v724_v19 = vrot.slane %v722_v18, 1 }
 0x1d5   : > { %v734_v16 = vadd.f32 %v732_v15, %v730_v14 }
 0x1d6   : > { %v726_v20 = vadd.f32 %v916_v9, %v724_v19 }
 0x1d7   : > { %v736_v17 = vrot.slane %v734_v16, 7 }
 0x1d9   : > { %921 = vrcp.f32 %v736_v17 }
 0x1e6   : > { %v922_v21 = vpop.eup %921 }
 0x1e7   : > { %v739_v22 = vmul.f32 %v922_v21, %v726_v20 }
 0x1e9   : > { %740 = vst [vmem:[%s241_s11 - $0x1] sm:$0x2] %v739_v22 }
 0x1ea   : > { %936 = shalt.err (!%p933_p3)
}
 0x1eb   : > { %s937_s20 = scalar_lea.hbm %s752_s15, 16  ;;  %s941_s29 = scalar_lea.hbm %s1320_s6, 32 }
 0x1ec   : > { %p938_p4 = scmp.ne.s32.totalorder %s752_s15, %s937_s20  ;;  %p942_p9 = scmp.lt.s32.totalorder %s752_s15, %s1320_s6 }
 0x1ed   : > { %p943_p10 = scmp.lt.s32.totalorder %s941_s29, %s937_s20 }
 0x1ee   : > { %p939_p7 = pnand %p938_p4, %p1062_p5 }
 0x1ef   : > { %p944_p11 = por %p943_p10, %p942_p9 }
 0x1f0   : > { %p940_p8 = pneg %p939_p7 }
 0x1f2   : > { %p945_p12 = pnand %p944_p11, %p940_p8 }
 0x1f4   : > { %948 = shalt.err (!%p945_p12)
}
 0x1f5   : > { %871 = dma.vmem_to_hbm [thread:$0]  (%p1062_p5), %s755_s12, 16, %s752_s15, %s742_s16  }
 0x1f6 PF: > { %p877_p13 = scmp.ge.s32.totalorder %s983_s24, 2  ;;  %s766_s11 = sand.u32 1, %s971_s21  }
 0x1f7   : > { %s767_s13 = scalar_lea.sflag [#allocation3], %s766_s11 }
 0x1f8   : > { %p874_p0 = pnand %p877_p13, %p1066_p6 }
 0x1fa   : > { %p875_p1 = pneg %p874_p0 }
 0x1fc   : > { %966 = dma.done.wait (%p875_p1), %s767_s13, 16  }
 0x1fd   : > { %968 = vsyncadd (%p875_p1), %s767_s13, 4294967280  ;;  %p16_p2 = scmp.ge.s32.totalorder %s1049_s27, 4   ;;  %s1323_s21 = smov %s975_s22 }
 0x1fe   : > { %s1324_s22 = smov %s979_s23  ;;  %s1325_s23 = smov %s1060_s30 }
 0x1ff   : > { %s1326_s24 = smov %s1049_s27  ;;  %18 = sbr.rel (!%p16_p2) target bundleno = 3 (0x3), region = 79 }
 0x204   :  { %771 = vsyncpa [#allocation3], 1 }
 0x205   :  { %773 = vsyncpa [#allocation3 + $0x1], 1 }

</bundles_post_ra>
